<compile_context>
chip_gen: v5e
topology: v5e:2x2
jax: 0.10.0
libtpu: 0.0.40
codegen_flags: <defaults>
</compile_context>

<pallas_src>
import jax
import jax.numpy as jnp
from jax.experimental import pallas as pl
from jax.experimental.pallas import tpu as pltpu

IN_FEATURES = 128
OUT_FEATURES = 4


def classifier_kernel(x_ref, w_ref, b_ref, o_ref):
    # x: (tb, 128) f32   w: (128, 4) f32   b: (1, 4) f32   o: (tb, 4) f32
    x = x_ref[...]
    w = w_ref[...]
    b = b_ref[...]
    acc = jnp.dot(x, w, preferred_element_type=jnp.float32)  # MXU, f32 accum
    o_ref[...] = jnp.maximum(acc + b, 0.0)                   # bias + ReLU in f32


def classifier_forward(x, params, *, tile_b=512):
    """x: (B, 128) f32; params = (w, b) with w: (128, 4) [in, out], b: (4,)."""
    w, b = params
    assert x.shape[1] == IN_FEATURES
    B = x.shape[0]

    # Single block if the whole batch fits in one tile (block == full dim is
    # always legal); otherwise fixed tile (multiple of 8 sublanes) and let the
    # grid boundary handle the ragged last tile.
    if B <= tile_b:
        tb = B
    else:
        assert tile_b % 8 == 0
        tb = tile_b
    grid = (pl.cdiv(B, tb),)

    bias2d = b.reshape(1, OUT_FEATURES).astype(jnp.float32)  # 16 B, negligible
    w = w.astype(x.dtype)

    out = pl.pallas_call(
        classifier_kernel,
        out_shape=jax.ShapeDtypeStruct((B, OUT_FEATURES), jnp.float32),
        grid_spec=pltpu.PrefetchScalarGridSpec(
            num_scalar_prefetch=0,
            grid=grid,
            in_specs=[
                # streamed x tile (native dtype, no wrapper cast/pad)
                pl.BlockSpec((tb, IN_FEATURES), lambda i: (i, 0)),
                # resident weights/bias (constant block index -> fetched once)
                pl.BlockSpec((IN_FEATURES, OUT_FEATURES), lambda i: (0, 0)),
                pl.BlockSpec((1, OUT_FEATURES), lambda i: (0, 0)),
            ],
            out_specs=pl.BlockSpec((tb, OUT_FEATURES), lambda i: (i, 0)),
        ),
        compiler_params=pltpu.CompilerParams(
            dimension_semantics=("parallel",),  # v7x: shard batch tiles over 2 TCs
        ),
    )(x, w, bias2d)

    return out


def init_params(key):
    """Deterministic init mimicking nn.Linear default (uniform(+-1/sqrt(fan_in)))."""
    kw, kb = jax.random.split(key)
    bound = 1.0 / jnp.sqrt(IN_FEATURES)
    # stored transposed relative to PyTorch: (in, out) so the kernel does x @ W
    w = jax.random.uniform(kw, (IN_FEATURES, OUT_FEATURES), jnp.float32, -bound, bound)
    b = jax.random.uniform(kb, (OUT_FEATURES,), jnp.float32, -bound, bound)
    return (w, b)


def _reference(x, params):
    w, b = params
    return jnp.maximum(x @ w + b[None, :], 0.0)


if __name__ == "__main__":
    key = jax.random.PRNGKey(0)
    k_x, k_x2, k_p = jax.random.split(key, 3)
    params = init_params(k_p)

    # Small shape consistent with the module's forward: (batch, 128).
    B = 8
    x = jax.random.normal(k_x, (B, IN_FEATURES), dtype=jnp.float32)
    out = classifier_forward(x, params)
    jax.block_until_ready(out)
    assert out.shape == (B, OUT_FEATURES)
    ref = _reference(x, params)
    assert jnp.allclose(out, ref, rtol=2e-3, atol=2e-3)
    assert jnp.all(out >= 0.0)  # ReLU

    # Exercise the multi-tile grid + ragged last tile (B not a multiple of
    # tile_b or 8) -- handled entirely by the grid, no host-side padding.
    B2 = 2500
    x2 = jax.random.normal(k_x2, (B2, IN_FEATURES), dtype=jnp.float32)
    out2 = classifier_forward(x2, params)
    jax.block_until_ready(out2)
    assert out2.shape == (B2, OUT_FEATURES)
    ref2 = _reference(x2, params)
    assert jnp.allclose(out2, ref2, rtol=2e-3, atol=2e-3)

    print("KERNEL_OK")
</pallas_src>

<mosaic_0001>
module attributes {stable_mosaic.version = 11 : i64} {
  func.func @classifier_kernel(%arg0: i32, %arg1: memref<8x128xf32, #tpu.memory_space<vmem>>, %arg2: memref<128x4xf32, #tpu.memory_space<vmem>>, %arg3: memref<1x4xf32, #tpu.memory_space<vmem>>, %arg4: memref<8x4xf32, #tpu.memory_space<vmem>>) attributes {dimension_semantics = [#tpu.dimension_semantics<parallel>], iteration_bounds = array<i64: 1>, scalar_prefetch = 0 : i64, scratch_operands = 0 : i64, tpu.core_type = #tpu.core_type<tc>, window_params = [{transform_indices = @transform_0, window_bounds = array<i64: 8, 128>}, {pipeline_mode = #tpu.pipeline_mode<synchronous>, transform_indices = @transform_1, window_bounds = array<i64: 128, 4>}, {pipeline_mode = #tpu.pipeline_mode<synchronous>, transform_indices = @transform_2, window_bounds = array<i64: 1, 4>}, {transform_indices = @transform_3, window_bounds = array<i64: 8, 4>}]} {
    %c0 = arith.constant 0 : index
    %c0_0 = arith.constant 0 : index
    %0 = vector.load %arg1[%c0, %c0_0] : memref<8x128xf32, #tpu.memory_space<vmem>>, vector<8x128xf32>
    %c0_1 = arith.constant 0 : index
    %c0_2 = arith.constant 0 : index
    %1 = vector.load %arg2[%c0_1, %c0_2] : memref<128x4xf32, #tpu.memory_space<vmem>>, vector<128x4xf32>
    %c0_3 = arith.constant 0 : index
    %c0_4 = arith.constant 0 : index
    %2 = vector.load %arg3[%c0_3, %c0_4] : memref<1x4xf32, #tpu.memory_space<vmem>>, vector<1x4xf32>
    %cst = arith.constant dense<0.000000e+00> : vector<8x4xf32>
    %3 = tpu.matmul %0, %1, %cst {dimension_numbers = #tpu.dot_dimension_numbers<[1], [0], [0], [1], [0, 0, 1, 1], [], []>} : vector<8x128xf32>, vector<128x4xf32>, vector<8x4xf32> -> vector<8x4xf32>
    %4 = vector.broadcast %2 : vector<1x4xf32> to vector<8x4xf32>
    %5 = arith.addf %3, %4 : vector<8x4xf32>
    %cst_5 = arith.constant 0.000000e+00 : f32
    %6 = vector.broadcast %cst_5 : f32 to vector<8x4xf32>
    %7 = arith.maximumf %5, %6 : vector<8x4xf32>
    %c0_6 = arith.constant 0 : index
    %c0_7 = arith.constant 0 : index
    %8 = vector.load %arg4[%c0_6, %c0_7] : memref<8x4xf32, #tpu.memory_space<vmem>>, vector<8x4xf32>
    tpu.vector_store %arg4[%c0_6, %c0_7], %7 {strides = array<i32>} : memref<8x4xf32, #tpu.memory_space<vmem>>, vector<8x4xf32>,
    return
  }
  func.func @transform_0(%arg0: i32) -> (i32, i32) {
    %c0_i32 = arith.constant 0 : i32
    %c0_i32_0 = arith.constant 0 : i32
    return %arg0, %c0_i32 : i32, i32
  }
  func.func @transform_1(%arg0: i32) -> (i32, i32) {
    %c0_i32 = arith.constant 0 : i32
    %c0_i32_0 = arith.constant 0 : i32
    %c0_i32_1 = arith.constant 0 : i32
    return %c0_i32, %c0_i32_0 : i32, i32
  }
  func.func @transform_2(%arg0: i32) -> (i32, i32) {
    %c0_i32 = arith.constant 0 : i32
    %c0_i32_0 = arith.constant 0 : i32
    %c0_i32_1 = arith.constant 0 : i32
    return %c0_i32, %c0_i32_0 : i32, i32
  }
  func.func @transform_3(%arg0: i32) -> (i32, i32) {
    %c0_i32 = arith.constant 0 : i32
    %c0_i32_0 = arith.constant 0 : i32
    return %arg0, %c0_i32 : i32, i32
  }
}

</mosaic_0001>

<bundles_post_ra>
// kernel: tpu_custom_call.1
= control target key start
LH: loop header
LB: loop body
LE: loop exit
PB: predicated region body
PF: predicated region fallthrough
CT: control target
= control target key end

     0   :  { %vm56_vm0 = vcmask 31744   ;;  %s140_s1 = inlined_call_operand.vmem [shape: f32[128,4], index: 1, kind: input, shape index: {}]   ;;  %s141_s2 = inlined_call_operand.vmem [shape: f32[1,4], index: 2, kind: input, shape index: {}]   ;;  %s142_s0 = inlined_call_operand.vmem [shape: f32[8,128], index: 0, kind: input, shape index: {}]   ;;  %s143_s3 = inlined_call_operand.vmem [shape: f32[8,4], index: 3, kind: output, shape index: {}]  }
   0x1   :  { %v30_v0 = vld [vmem:[%s140_s1 + $0x78] sm:$0xff]  ;;  %v29_v1 = vld [vmem:[%s140_s1 + $0x70] sm:$0xff]  ;;  %v28_v2 = vld [vmem:[%s140_s1 + $0x68] sm:$0xff] }
   0x2   :  { %35 = vmatpush.msra.mxu0 %v30_v0  ;;  %v27_v3 = vld [vmem:[%s140_s1 + $0x60] sm:$0xff]  ;;  %v26_v4 = vld [vmem:[%s140_s1 + $0x58] sm:$0xff]  ;;  %v25_v5 = vld [vmem:[%s140_s1 + $0x50] sm:$0xff] }
   0x3   :  { %v24_v6 = vld [vmem:[%s140_s1 + $0x48] sm:$0xff]  ;;  %v23_v7 = vld [vmem:[%s140_s1 + $0x40] sm:$0xff]  ;;  %v22_v8 = vld [vmem:[%s140_s1 + $0x38] sm:$0xff] }
   0x4   :  { %36 = vmatpush.msra.mxu0 %v29_v1  ;;  %v21_v9 = vld [vmem:[%s140_s1 + $0x30] sm:$0xff]  ;;  %v20_v10 = vld [vmem:[%s140_s1 + $0x28] sm:$0xff]  ;;  %v19_v11 = vld [vmem:[%s140_s1 + $0x20] sm:$0xff] }
   0x5   :  { %v18_v12 = vld [vmem:[%s140_s1 + $0x18] sm:$0xff]  ;;  %v17_v13 = vld [vmem:[%s140_s1 + $0x10] sm:$0xff]  ;;  %v16_v14 = vld [vmem:[%s140_s1 + $0x8] sm:$0xff] }
   0x6   :  { %37 = vmatpush.msra.mxu0 %v28_v2  ;;  %v15_v15 = vld [vmem:[%s140_s1] sm:$0xff] }
   0x7   :  { %v14_v16 = vld [vmem:[%s142_s0] sm:$0xff] }
   0x8   :  { %38 = vmatpush.msra.mxu0 %v27_v3  ;;  %v62_v17 = vld [vmem:[%s141_s2] ss:$0 sm:$0xff] }
   0xa   :  { %39 = vmatpush.msra.mxu0 %v26_v4 }
   0xc   :  { %40 = vmatpush.msra.mxu0 %v25_v5 }
   0xe   :  { %41 = vmatpush.msra.mxu0 %v24_v6 }
  0x10   :  { %42 = vmatpush.msra.mxu0 %v23_v7 }
  0x12   :  { %43 = vmatpush.msra.mxu0 %v22_v8 }
  0x14   :  { %44 = vmatpush.msra.mxu0 %v21_v9 }
  0x16   :  { %45 = vmatpush.msra.mxu0 %v20_v10 }
  0x18   :  { %46 = vmatpush.msra.mxu0 %v19_v11 }
  0x1a   :  { %47 = vmatpush.msra.mxu0 %v18_v12 }
  0x1c   :  { %48 = vmatpush.msra.mxu0 %v17_v13 }
  0x1e   :  { %49 = vmatpush.msra.mxu0 %v16_v14 }
  0x20   :  { %50 = vmatpush.msra.mxu0 %v15_v15 }
  0x21   :  { %51 = vmatmul.f32.vlgmr.msra.gmra.mxu0 %v14_v16 }
  0x9e   :  { %v52_v18 = vpop.f32.mrf.mxu0 }
  0x9f   :  { %v53_v19 = vadd.f32 %v62_v17, %v52_v18 }
  0xa1   :  { %v55_v20 = vmax.f32 %v53_v19, 0.0 }
  0xa3   :  { %57 = vst.msk [vmem:[%s143_s3] sm:$0xff] %vm56_vm0, %v55_v20 }

</bundles_post_ra>
